<compile_context>
chip_gen: v7x
topology: tpu7x:2x2x1
jax: 0.10.0
libtpu: 0.0.40
codegen_flags: <defaults>
</compile_context>

<pallas_src>
import functools
import math

import jax
import jax.numpy as jnp
from jax.experimental import pallas as pl
from jax.experimental.pallas import tpu as pltpu


# ----------------------------------------------------------------------------
# Tiling helpers
# ----------------------------------------------------------------------------
def _round_up(x, m):
    return (x + m - 1) // m * m


def _vmem_budget_bytes():
    """Generation-aware VMEM budgets (v5e/v6e: 128 MiB physical, v7x: 64 MiB)."""
    try:
        cap = int(pltpu.get_tpu_info().vmem_capacity_bytes)
    except Exception:
        cap = 64 * 1024 * 1024  # conservative (v7x-sized) fallback
    tile_budget = min(int(cap * 0.55), 96 * 1024 * 1024)  # tiles + resident weights
    vmem_limit = min(int(cap * 0.70), 112 * 1024 * 1024)  # explicit scoped-VMEM limit
    return tile_budget, vmem_limit


def _align_rows(tm):
    """Round a row tile down to an MXU/vst-friendly granularity."""
    if tm >= 256:  # v6e/v7x MXU is 2x256^2 (256 is also a multiple of v5e's 128)
        return tm // 256 * 256
    if tm >= 128:
        return tm // 128 * 128
    return max(8, tm // 8 * 8)


def _split_for_megacore(tm, m8):
    """If one tile would swallow the whole row range, split it so the "parallel"
    M axis gives v7x's second TensorCore work (no-op on v5e/v6e)."""
    if tm >= m8:
        tm = m8
        if m8 >= 512:
            tm = _round_up((m8 + 1) // 2, 256)
    return tm


def _choose_tm_resident(M, K_pad, N_pad, x_bytes, w_bytes, out_bytes, budget):
    """Largest row tile with double-buffered X/out tiles + resident W in budget.

    Counts TWO pipeline buffers for every operand (including the constant
    index-map weights/bias) so the real VMEM usage never exceeds the budget.
    Returns None when even an 8-row tile will not fit -> K-tiled fallback.
    """
    resident = 2 * w_bytes * K_pad * N_pad + 2 * 4 * N_pad
    per_row = 2 * x_bytes * K_pad + 2 * out_bytes * N_pad
    avail = budget - resident
    if avail < 8 * per_row:
        return None
    tm = min(avail // per_row, 1024)  # 512-1024 rows ~ HBM-roofline sweet spot
    tm = _split_for_megacore(tm, _round_up(M, 8))
    return int(_align_rows(tm))


def _choose_tm_ktiled(M, tk, N_pad, x_bytes, w_bytes, out_bytes, budget):
    resident = 2 * w_bytes * tk * N_pad + 2 * 4 * N_pad           # streamed W tile + bias
    per_row = 2 * x_bytes * tk + 2 * out_bytes * N_pad + 4 * N_pad  # + f32 accumulator
    avail = max(budget - resident, 8 * per_row)
    tm = min(avail // per_row, 1024)
    tm = _split_for_megacore(tm, _round_up(M, 8))
    return int(_align_rows(tm))


# ----------------------------------------------------------------------------
# Kernels
# ----------------------------------------------------------------------------
def _proj_kernel(compute_dtype, x_ref, w_ref, b_ref, o_ref):
    # x_ref: (TM, K_pad)  w_ref: (K_pad, N_pad)  b_ref: (1, N_pad) f32  o_ref: (TM, N_pad)
    x = x_ref[...]
    if x.dtype != compute_dtype:
        x = x.astype(compute_dtype)  # in-register cast; no extra HBM pass over X
    acc = jnp.dot(x, w_ref[...], preferred_element_type=jnp.float32)
    o_ref[...] = (acc + b_ref[...]).astype(o_ref.dtype)


def _proj_kernel_nchw(compute_dtype, x_ref, w_ref, b_ref, o_ref):
    # x_ref: (T_HW, K_pad)  o_ref: (N_pad, T_HW).  The result tile is stored
    # transposed (lane axis = tokens, still lane-dense since T_HW % 128 == 0),
    # so the final array is already channels-major and no XLA transpose pass
    # over the output is needed afterwards.
    x = x_ref[...]
    if x.dtype != compute_dtype:
        x = x.astype(compute_dtype)
    s = jnp.dot(x, w_ref[...], preferred_element_type=jnp.float32) + b_ref[...]
    o_ref[...] = jnp.transpose(s).astype(o_ref.dtype)  # XLU transpose, overlaps MXU/DMA


def _proj_kernel_ktiled(compute_dtype, x_ref, w_ref, b_ref, o_ref, acc_ref):
    # grid = (grid_m, grid_k); K is the trailing ("arbitrary") reduction axis.
    k = pl.program_id(1)

    @pl.when(k == 0)
    def _init():
        acc_ref[...] = jnp.zeros_like(acc_ref)

    x = x_ref[...]
    if x.dtype != compute_dtype:
        x = x.astype(compute_dtype)
    acc_ref[...] += jnp.dot(x, w_ref[...], preferred_element_type=jnp.float32)

    @pl.when(k == pl.num_programs(1) - 1)
    def _finalize():
        o_ref[...] = (acc_ref[...] + b_ref[...]).astype(o_ref.dtype)


# ----------------------------------------------------------------------------
# Wrapper
# ----------------------------------------------------------------------------
def prepare_conv_proj_weights(weight, bias, *, k_pad, n_pad, compute_dtype):
    """Pad/transpose the 1x1-conv weights once (callers under jit get this
    constant-folded; eager callers can hoist it out of the per-call path)."""
    out_channels, in_channels = weight.shape
    w2d = jnp.zeros((k_pad, n_pad), compute_dtype)
    w2d = w2d.at[:in_channels, :out_channels].set(weight.T.astype(compute_dtype))
    b2d = jnp.zeros((1, n_pad), jnp.float32)
    b2d = b2d.at[0, :out_channels].set(bias.astype(jnp.float32))
    return w2d, b2d


def post_vit_trans(x, weight, bias, *, use_bf16_compute=False,
                   output_layout="NCHW", k_tile=None):
    """Forward pass of PostViTTrans.

    Args:
      x:      (n, hw, c) float — ViT token sequence (hw must be a square).
      weight: (out_channels, c) — Conv2d 1x1 weight squeezed to 2D.
      bias:   (out_channels,)   — Conv2d bias.
      use_bf16_compute: run the matmul with bf16 operands / f32 accumulation
        (faster on every TPU generation; numerics differ slightly from f32).
      output_layout: "NCHW" (PyTorch-compatible, default) or "NHWC" (skips the
        channel transpose entirely for downstream consumers that accept it).
      k_tile: force the K-tiled accumulator path with this contraction tile
        (None = automatic; K-tiling only kicks in when W does not fit VMEM).

    Returns:
      (n, out_channels, h, w) for "NCHW", (n, h, w, out_channels) for "NHWC".
    """
    n, hw, c = x.shape
    side = math.isqrt(hw)
    if side * side != hw:
        raise ValueError(f"hw={hw} is not a perfect square")
    if output_layout not in ("NCHW", "NHWC"):
        raise ValueError(f"unknown output_layout {output_layout!r}")

    K = c
    N = weight.shape[0]
    out_dtype = x.dtype
    compute_dtype = jnp.bfloat16 if use_bf16_compute else x.dtype
    x_bytes = jnp.dtype(x.dtype).itemsize
    w_bytes = jnp.dtype(compute_dtype).itemsize
    out_bytes = jnp.dtype(out_dtype).itemsize

    # Lane-dense output: pad out_channels to a multiple of 128 (sliced off later).
    N_pad = _round_up(N, 128)
    # Lane-align K only when the zero-pad is cheap (<= 1/8 extra X-read bytes).
    K_pad = _round_up(K, 128)
    if K_pad * 8 > 9 * K:
        K_pad = K

    tile_budget, vmem_limit = _vmem_budget_bytes()
    M = n * hw

    # --- pick an execution strategy -----------------------------------------
    tm = _choose_tm_resident(M, K_pad, N_pad, x_bytes, w_bytes, out_bytes, tile_budget)
    use_k_tiling = (k_tile is not None) or (tm is None)

    fuse_nchw = (output_layout == "NCHW") and (not use_k_tiling) and (hw % 128 == 0)
    if fuse_nchw:
        t_hw = _choose_tm_resident(hw, K_pad, N_pad, x_bytes, w_bytes, out_bytes,
                                   tile_budget)
        if t_hw is None:
            fuse_nchw = False
        else:
            # Snap to a multiple of 128 that divides hw (lane-dense transposed stores).
            t_hw = min(t_hw, hw) // 128 * 128
            while t_hw >= 128 and hw % t_hw != 0:
                t_hw -= 128
            if t_hw < 128:
                fuse_nchw = False

    # -------------------------------------------------------------------------
    # Path A: fused transposed-store kernel -> output is already (n, C, hw).
    # -------------------------------------------------------------------------
    if fuse_nchw:
        xk = x if K_pad == K else jnp.pad(x, ((0, 0), (0, 0), (0, K_pad - K)))
        w2d, b2d = prepare_conv_proj_weights(
            weight, bias, k_pad=K_pad, n_pad=N_pad, compute_dtype=compute_dtype)
        grid = (n, hw // t_hw)
        cost = pl.CostEstimate(
            flops=2 * n * hw * K_pad * N_pad,
            transcendentals=0,
            bytes_accessed=x_bytes * n * hw * K_pad + w_bytes * K_pad * N_pad
            + out_bytes * n * hw * N_pad,
        )
        y3 = pl.pallas_call(
            functools.partial(_proj_kernel_nchw, compute_dtype),
            out_shape=jax.ShapeDtypeStruct((n, N_pad, hw), out_dtype),
            grid_spec=pltpu.PrefetchScalarGridSpec(
                num_scalar_prefetch=0,
                grid=grid,
                in_specs=[
                    pl.BlockSpec((None, t_hw, K_pad), lambda b, j: (b, j, 0)),  # X tokens
                    pl.BlockSpec((K_pad, N_pad), lambda b, j: (0, 0)),          # W resident
                    pl.BlockSpec((1, N_pad), lambda b, j: (0, 0)),              # bias resident
                ],
                out_specs=pl.BlockSpec((None, N_pad, t_hw), lambda b, j: (b, 0, j)),
            ),
            compiler_params=pltpu.CompilerParams(
                dimension_semantics=("parallel", "parallel"),
                vmem_limit_bytes=vmem_limit,
            ),
            cost_estimate=cost,
        )(xk, w2d, b2d)
        return y3[:, :N, :].reshape(n, N, side, side)

    # -------------------------------------------------------------------------
    # Paths B/C: token-major (M, N) matmul; B = resident W, C = K-tiled fallback.
    # -------------------------------------------------------------------------
    w2d, b2d = prepare_conv_proj_weights(
        weight, bias, k_pad=K_pad, n_pad=N_pad, compute_dtype=compute_dtype)

    if use_k_tiling:
        tk = 512 if k_tile is None else int(k_tile)
        tk = max(128, min(_round_up(tk, 128), _round_up(K, 128)))
        K_pad_kt = _round_up(K, tk)
        if K_pad_kt != K_pad:
            # Re-pad the weights to the K-tile multiple.
            K_pad = K_pad_kt
            w2d, b2d = prepare_conv_proj_weights(
                weight, bias, k_pad=K_pad, n_pad=N_pad, compute_dtype=compute_dtype)
        TM = _choose_tm_ktiled(M, tk, N_pad, x_bytes, w_bytes, out_bytes, tile_budget)
    else:
        TM = tm

    x2d = x.reshape(M, K)
    M_pad = _round_up(M, TM)
    if M_pad != M or K_pad != K:
        x2d = jnp.pad(x2d, ((0, M_pad - M), (0, K_pad - K)))

    cost = pl.CostEstimate(
        flops=2 * M_pad * K_pad * N_pad,
        transcendentals=0,
        bytes_accessed=x_bytes * M_pad * K_pad + w_bytes * K_pad * N_pad
        + out_bytes * M_pad * N_pad,
    )

    if not use_k_tiling:
        y2d = pl.pallas_call(
            functools.partial(_proj_kernel, compute_dtype),
            out_shape=jax.ShapeDtypeStruct((M_pad, N_pad), out_dtype),
            grid_spec=pltpu.PrefetchScalarGridSpec(
                num_scalar_prefetch=0,
                grid=(M_pad // TM,),
                in_specs=[
                    pl.BlockSpec((TM, K_pad), lambda i: (i, 0)),       # X tiled over M
                    pl.BlockSpec((K_pad, N_pad), lambda i: (0, 0)),    # W resident
                    pl.BlockSpec((1, N_pad), lambda i: (0, 0)),        # bias resident
                ],
                out_specs=pl.BlockSpec((TM, N_pad), lambda i: (i, 0)),
            ),
            compiler_params=pltpu.CompilerParams(
                dimension_semantics=("parallel",),
                vmem_limit_bytes=vmem_limit,
            ),
            cost_estimate=cost,
        )(x2d, w2d, b2d)
    else:
        y2d = pl.pallas_call(
            functools.partial(_proj_kernel_ktiled, compute_dtype),
            out_shape=jax.ShapeDtypeStruct((M_pad, N_pad), out_dtype),
            grid_spec=pltpu.PrefetchScalarGridSpec(
                num_scalar_prefetch=0,
                grid=(M_pad // TM, K_pad // tk),
                in_specs=[
                    pl.BlockSpec((TM, tk), lambda i, k: (i, k)),
                    pl.BlockSpec((tk, N_pad), lambda i, k: (k, 0)),
                    pl.BlockSpec((1, N_pad), lambda i, k: (0, 0)),
                ],
                out_specs=pl.BlockSpec((TM, N_pad), lambda i, k: (i, 0)),
                scratch_shapes=[pltpu.VMEM((TM, N_pad), jnp.float32)],
            ),
            compiler_params=pltpu.CompilerParams(
                dimension_semantics=("parallel", "arbitrary"),
                vmem_limit_bytes=vmem_limit,
            ),
            cost_estimate=cost,
        )(x2d, w2d, b2d)

    y = y2d[:M, :N].reshape(n, side, side, N)
    if output_layout == "NHWC":
        return y
    # Fallback NCHW transpose (only when hw % 128 != 0 or the K-tiled path was
    # used); costs one extra XLA pass over the output.  The fused kernel above
    # removes it whenever the token count allows lane-dense transposed stores.
    return jnp.transpose(y, (0, 3, 1, 2))


def init_conv_proj_params(key, in_channels, out_channels):
    """Init mimicking nn.Conv2d defaults (uniform(+-1/sqrt(fan_in)))."""
    k_w, k_b = jax.random.split(key)
    fan_in = in_channels * 1 * 1
    bound = 1.0 / math.sqrt(fan_in)
    weight = jax.random.uniform(
        k_w, (out_channels, in_channels), jnp.float32, -bound, bound)
    bias = jax.random.uniform(k_b, (out_channels,), jnp.float32, -bound, bound)
    return weight, bias


if __name__ == "__main__":
    key = jax.random.PRNGKey(0)
    k_x, k_p, k_x3, k_x4 = jax.random.split(key, 4)

    def ref_fn(x, weight, bias):
        n_, hw_, c_ = x.shape
        s_ = math.isqrt(hw_)
        y = x.reshape(n_ * hw_, c_) @ weight.T + bias
        y = y.reshape(n_, s_, s_, weight.shape[0])
        return jnp.transpose(y, (0, 3, 1, 2))

    # 1) Default f32 path: batch=2, hw=16 (h=w=4), in_channels=32, out_channels=48.
    n, hw, c, oc = 2, 16, 32, 48
    x = jax.random.normal(k_x, (n, hw, c), dtype=jnp.float32)
    weight, bias = init_conv_proj_params(k_p, c, oc)
    y = jax.block_until_ready(post_vit_trans(x, weight, bias))
    assert y.shape == (n, oc, 4, 4), y.shape
    assert jnp.allclose(y, ref_fn(x, weight, bias), atol=1e-5, rtol=1e-5)

    # 2) bf16-operand / f32-accumulate fast path (looser tolerance).
    y_bf = jax.block_until_ready(post_vit_trans(x, weight, bias, use_bf16_compute=True))
    assert y_bf.shape == (n, oc, 4, 4), y_bf.shape
    assert jnp.allclose(y_bf, ref_fn(x, weight, bias), atol=5e-2, rtol=5e-2)

    # 3) hw % 128 == 0 -> fused transposed-store kernel (no XLA NCHW transpose).
    n3, hw3 = 2, 256
    x3 = jax.random.normal(k_x3, (n3, hw3, c), dtype=jnp.float32)
    y3 = jax.block_until_ready(post_vit_trans(x3, weight, bias))
    assert y3.shape == (n3, oc, 16, 16), y3.shape
    assert jnp.allclose(y3, ref_fn(x3, weight, bias), atol=1e-5, rtol=1e-5)

    # 4) Forced K-tiled accumulator path (robustness fallback for huge weights).
    c4 = 256
    x4 = jax.random.normal(k_x4, (2, 16, c4), dtype=jnp.float32)
    w4, b4 = init_conv_proj_params(k_p, c4, oc)
    y4 = jax.block_until_ready(post_vit_trans(x4, w4, b4, k_tile=128))
    assert y4.shape == (2, oc, 4, 4), y4.shape
    assert jnp.allclose(y4, ref_fn(x4, w4, b4), atol=1e-4, rtol=1e-4)

    print("KERNEL_OK")
</pallas_src>

<mosaic_0001>
module attributes {stable_mosaic.version = 11 : i64} {
  func.func @_proj_kernel(%arg0: i32, %arg1: memref<32x32xf32, #tpu.memory_space<vmem>>, %arg2: memref<32x128xf32, #tpu.memory_space<vmem>>, %arg3: memref<1x128xf32, #tpu.memory_space<vmem>>, %arg4: memref<32x128xf32, #tpu.memory_space<vmem>>) attributes {dimension_semantics = [#tpu.dimension_semantics<parallel>], iteration_bounds = array<i64: 1>, scalar_prefetch = 0 : i64, scratch_operands = 0 : i64, tpu.core_type = #tpu.core_type<tc>, window_params = [{transform_indices = @transform_0, window_bounds = array<i64: 32, 32>}, {pipeline_mode = #tpu.pipeline_mode<synchronous>, transform_indices = @transform_1, window_bounds = array<i64: 32, 128>}, {pipeline_mode = #tpu.pipeline_mode<synchronous>, transform_indices = @transform_2, window_bounds = array<i64: 1, 128>}, {transform_indices = @transform_3, window_bounds = array<i64: 32, 128>}]} {
    %c0 = arith.constant 0 : index
    %c0_0 = arith.constant 0 : index
    %0 = vector.load %arg1[%c0, %c0_0] : memref<32x32xf32, #tpu.memory_space<vmem>>, vector<32x32xf32>
    %c0_1 = arith.constant 0 : index
    %c0_2 = arith.constant 0 : index
    %1 = vector.load %arg2[%c0_1, %c0_2] : memref<32x128xf32, #tpu.memory_space<vmem>>, vector<32x128xf32>
    %cst = arith.constant dense<0.000000e+00> : vector<32x128xf32>
    %2 = tpu.matmul %0, %1, %cst {dimension_numbers = #tpu.dot_dimension_numbers<[1], [0], [0], [1], [0, 0, 1, 1], [], []>} : vector<32x32xf32>, vector<32x128xf32>, vector<32x128xf32> -> vector<32x128xf32>
    %c0_3 = arith.constant 0 : index
    %c0_4 = arith.constant 0 : index
    %3 = vector.load %arg3[%c0_3, %c0_4] : memref<1x128xf32, #tpu.memory_space<vmem>>, vector<1x128xf32>
    %4 = vector.broadcast %3 : vector<1x128xf32> to vector<32x128xf32>
    %5 = arith.addf %2, %4 : vector<32x128xf32>
    %c0_5 = arith.constant 0 : index
    %c0_6 = arith.constant 0 : index
    %6 = vector.load %arg4[%c0_5, %c0_6] : memref<32x128xf32, #tpu.memory_space<vmem>>, vector<32x128xf32>
    tpu.vector_store %arg4[%c0_5, %c0_6], %5 {strides = array<i32>} : memref<32x128xf32, #tpu.memory_space<vmem>>, vector<32x128xf32>,
    return
  }
  func.func @transform_0(%arg0: i32) -> (i32, i32) {
    %c0_i32 = arith.constant 0 : i32
    %c0_i32_0 = arith.constant 0 : i32
    return %arg0, %c0_i32 : i32, i32
  }
  func.func @transform_1(%arg0: i32) -> (i32, i32) {
    %c0_i32 = arith.constant 0 : i32
    %c0_i32_0 = arith.constant 0 : i32
    %c0_i32_1 = arith.constant 0 : i32
    return %c0_i32, %c0_i32_0 : i32, i32
  }
  func.func @transform_2(%arg0: i32) -> (i32, i32) {
    %c0_i32 = arith.constant 0 : i32
    %c0_i32_0 = arith.constant 0 : i32
    %c0_i32_1 = arith.constant 0 : i32
    return %c0_i32, %c0_i32_0 : i32, i32
  }
  func.func @transform_3(%arg0: i32) -> (i32, i32) {
    %c0_i32 = arith.constant 0 : i32
    %c0_i32_0 = arith.constant 0 : i32
    return %arg0, %c0_i32 : i32, i32
  }
}

</mosaic_0001>

<bundles_post_ra>
// kernel: tpu_custom_call.1
= control target key start
LH: loop header
LB: loop body
LE: loop exit
PB: predicated region body
PF: predicated region fallthrough
CT: control target
= control target key end

     0   :  { %8 = vsyncpa [#allocation3], 0  ;;  %s371_s0 = inlined_call_operand.hbm [shape: f32[32,32], index: 0, kind: input, shape index: {}]   ;;  %s372_s1 = inlined_call_operand.hbm [shape: f32[32,128], index: 1, kind: input, shape index: {}]   ;;  %s373_s2 = inlined_call_operand.vmem [shape: f32[1,128], index: 2, kind: input, shape index: {}]   ;;  %s374_s3 = inlined_call_operand.hbm [shape: f32[32,128], index: 3, kind: output, shape index: {}]  }
   0x1   :  { %9 = vsyncpa [#allocation6], 0 }
   0x2   :  { %10 = vsyncpa [#allocation4], 0  ;;  %s294_s12 = smov [#allocation2]   ;;  %s222_s16 = scalar_lea.hbm %s371_s0, 512 }
   0x3   :  { %s16_s13 = sshll.u32 %s294_s12, 4  ;;  %p223_p0 = scmp.ne.s32.totalorder %s371_s0, %s222_s16  ;;  %s17_s13 = int_to_ptr.vmem [resolvable:$true] %s16_s13 }
   0x4   :  { %p226_p1 = scmp.lt.u32.totalorder %s222_s16, %s371_s0 }
   0x6   :  { %p228_p2 = pnand %p226_p1, %p223_p0 }
   0x8   :  { %231 = shalt.err (!%p228_p2)
}
   0x9   :  { %s232_s21 = scalar_lea.vmem %s17_s13, 512  ;;  %p237_p4 = scmp.lt.s32.totalorder %s17_s13, %s17_s13 }
   0xa   :  { %p233_p3 = scmp.ne.s32.totalorder %s17_s13, %s232_s21  ;;  %p238_p5 = scmp.lt.s32.totalorder %s232_s21, %s232_s21 }
   0xc   :  { %p239_p6 = por %p238_p5, %p237_p4 }
   0xe   :  { %p240_p7 = pnand %p239_p6, %p233_p3 }
  0x10   :  { %243 = shalt.err (!%p240_p7)
}
  0x11   :  { %s295_s22 = smov 128   ;;  %s296_s23 = smov 8  }
  0x12   :  { %22 = dma.hbm_to_vmem [thread:$0]  %s371_s0, 512, %s17_s13, [#allocation3], %s295_s22, %s295_s22, %s296_s23  }
  0x13   :  { %s297_s26 = smov [#allocation5]   ;;  %s244_s30 = scalar_lea.hbm %s372_s1, 512 }
  0x14   :  { %s28_s27 = sshll.u32 %s297_s26, 4  ;;  %p245_p8 = scmp.ne.s32.totalorder %s372_s1, %s244_s30  ;;  %s29_s27 = int_to_ptr.vmem [resolvable:$true] %s28_s27 }
  0x15   :  { %p248_p9 = scmp.lt.u32.totalorder %s244_s30, %s372_s1 }
  0x17   :  { %p250_p10 = pnand %p248_p9, %p245_p8 }
  0x19   :  { %253 = shalt.err (!%p250_p10)
}
  0x1a   :  { %s254_s8 = scalar_lea.vmem %s29_s27, 512  ;;  %p259_p12 = scmp.lt.s32.totalorder %s29_s27, %s29_s27 }
  0x1b   :  { %p255_p11 = scmp.ne.s32.totalorder %s29_s27, %s254_s8  ;;  %p260_p13 = scmp.lt.s32.totalorder %s254_s8, %s254_s8 }
  0x1d   :  { %p261_p0 = por %p260_p13, %p259_p12 }
  0x1f   :  { %p262_p1 = pnand %p261_p0, %p255_p11 }
  0x21   :  { %265 = shalt.err (!%p262_p1)
}
  0x22   :  { %34 = dma.hbm_to_vmem [thread:$0]  %s372_s1, 512, %s29_s27, [#allocation6], %s295_s22, %s295_s22, %s296_s23  }
  0x23   :  { %288 = dma.done.wait [#allocation3], 512  }
  0x24   :  { %289 = vsyncadd [#allocation3], 4294966784 }
  0x25   :  { %290 = dma.done.wait [#allocation6], 512  }
  0x26   :  { %291 = vsyncadd [#allocation6], 4294966784  ;;  %vm58_vm0 = vcmask 261120   ;;  %v47_v0 = vld [vmem:[#allocation5] sm:$0xff]  ;;  %v48_v1 = vld [vmem:[#allocation5 + $0x8] sm:$0xff]  ;;  %s298_s11 = smov [#allocation7]  }
  0x27   :  { %v49_v2 = vld [vmem:[#allocation5 + $0x10] sm:$0xff]  ;;  %v205_v3 = vpack.c.bf16 %v48_v1, %v47_v0  ;;  %v50_v4 = vld [vmem:[#allocation5 + $0x18] sm:$0xff]  ;;  %v43_v5 = vld [vmem:[#allocation2] sm:$0xff]  ;;  %s165_s12 = sshll.u32 %s298_s11, 4  ;;  %s166_s12 = int_to_ptr.vmem [resolvable:$true] %s165_s12 }
  0x28   :  { %v45_v6 = vld [vmem:[#allocation2 + $0x10] sm:$0xff]  ;;  %v209_v7 = vpack.c.bf16 %v50_v4, %v49_v2  ;;  %199 = vmatprep.mubr.msk.f32.mxu0 %vm58_vm0, %v43_v5  ;;  %v44_v8 = vld [vmem:[#allocation2 + $0x8] sm:$0xff]  ;;  %v46_v9 = vld [vmem:[#allocation2 + $0x18] sm:$0xff]  ;;  %s266_s13 = scalar_lea.vmem %s166_s12, 512  ;;  %p271_p3 = scmp.lt.s32.totalorder %s166_s12, %s166_s12 }
  0x29   :  { %202 = vmatprep.mubr.msk.f32.mxu1 %vm58_vm0, %v45_v6  ;;  %206 = vmatprep.subr.bf16.mxu0 %v205_v3  ;;  %v178_v10 = vld [vmem:[%s373_s2] ss:$0 sm:$0xff]  ;;  %p267_p2 = scmp.ne.s32.totalorder %s166_s12, %s266_s13  ;;  %p272_p4 = scmp.lt.s32.totalorder %s266_s13, %s266_s13 }
  0x2a   :  { %213 = vmatprep.subr.bf16.mxu1 %v205_v3  ;;  %208 = vmatpush3.bf16.msra.mxu0 %v205_v3 }
  0x2b   :  { %215 = vmatpush3.bf16.msra.mxu1 %v205_v3  ;;  %210 = vmatprep.subr.bf16.mxu0 %v209_v7  ;;  %p273_p5 = por %p272_p4, %p271_p3 }
  0x2c   :  { %214 = vmatprep.subr.bf16.mxu1 %v209_v7 }
  0x2d   :  { %p274_p6 = pnand %p273_p5, %p267_p2 }
  0x2e   :  { %212 = vmatpush3.bf16.msra.mxu0 %v209_v7 }
  0x2f   :  { %216 = vmatpush3.bf16.msra.mxu1 %v209_v7 }
  0x31   :  { %200 = vmatmul.mubr.msk.f32.vlgmr.msra.gmra.mrb[0].mxu0 %vm58_vm0, %v44_v8 }
  0x32   :  { %203 = vmatmul.mubr.msk.f32.vlgmr.msra.gmra.mrb[0].mxu1 %vm58_vm0, %v46_v9 }
 0x104   :  { %v201_v11 = vpop.f32.mrb[0].mxu0 }
 0x105   :  { %v204_v12 = vpop.f32.mrb[0].mxu1  ;;  %v143_v13 = vadd.f32 %v201_v11, %v178_v10  ;;  %v137_v15 = vpop.f32.mrb[1].mxu0 }
 0x106   :  { %v153_v14 = vadd.f32 %v204_v12, %v178_v10  ;;  %v147_v16 = vpop.f32.mrb[1].mxu1  ;;  %v138_v17 = vadd.f32 %v178_v10, %v137_v15 }
 0x107   :  { %v148_v18 = vadd.f32 %v178_v10, %v147_v16  ;;  %157 = vst [vmem:[#allocation7 + $0x8] sm:$0xff] %v143_v13 }
 0x108   :  { %159 = vst [vmem:[#allocation7 + $0x18] sm:$0xff] %v153_v14  ;;  %156 = vst [vmem:[#allocation7] sm:$0xff] %v138_v17 }
 0x109   :  { %158 = vst [vmem:[#allocation7 + $0x10] sm:$0xff] %v148_v18 }
 0x10a   :  { %277 = shalt.err (!%p274_p6)
}
 0x10b   :  { %s278_s15 = scalar_lea.hbm %s374_s3, 512 }
 0x10c   :  { %p279_p7 = scmp.ne.s32.totalorder %s374_s3, %s278_s15  ;;  %p282_p8 = scmp.lt.u32.totalorder %s278_s15, %s374_s3 }
 0x10e   :  { %p284_p9 = pnand %p282_p8, %p279_p7 }
 0x110   :  { %287 = shalt.err (!%p284_p9)
}
 0x111   :  { %171 = dma.vmem_to_hbm [thread:$0]  %s166_s12, 512, %s374_s3, [#allocation4], %s295_s22, %s295_s22, %s296_s23  }
 0x112   :  { %292 = dma.done.wait [#allocation4], 512  }
 0x113   :  { %293 = vsyncadd [#allocation4], 4294966784 }
 0x114   :  { %175 = vsyncpa [#allocation3], 1 }
 0x115   :  { %176 = vsyncpa [#allocation6], 1 }
 0x116   :  { %177 = vsyncpa [#allocation4], 1 }

</bundles_post_ra>
